<compile_context>
chip_gen: v7x
topology: tpu7x:2x2x1
jax: 0.10.0
libtpu: 0.0.40
codegen_flags: <defaults>
</compile_context>

<pallas_src>
import functools
import math

import jax
import jax.numpy as jnp
from jax.experimental import pallas as pl
from jax.experimental.pallas import tpu as pltpu


# ---------------------------------------------------------------------------
# Pass 1: per-head Q/K/V projections  (N, S, D) -> (N, H, S, hd) bf16.
# ---------------------------------------------------------------------------
def _projection_kernel(xq_ref, xk_ref, xv_ref, wq_ref, wk_ref, wv_ref,
                       qp_ref, kp_ref, vp_ref):
    # x blocks: (1, ts, D); weight blocks: (1, D, hd); outs: (1, 1, ts, hd).
    qp_ref[0, 0] = jnp.dot(xq_ref[0], wq_ref[0],
                           preferred_element_type=jnp.float32).astype(qp_ref.dtype)
    kp_ref[0, 0] = jnp.dot(xk_ref[0], wk_ref[0],
                           preferred_element_type=jnp.float32).astype(kp_ref.dtype)
    vp_ref[0, 0] = jnp.dot(xv_ref[0], wv_ref[0],
                           preferred_element_type=jnp.float32).astype(vp_ref.dtype)


# ---------------------------------------------------------------------------
# Pass 2: flash attention over packed head groups + fused output projection.
# ---------------------------------------------------------------------------
def _attention_kernel(qp_ref, kp_ref, vp_ref, wo_ref, bo_ref, o_ref,
                      m_scr, l_scr, acc_scr, out_scr):
    g = pl.program_id(2)
    ki = pl.program_id(3)
    ng = pl.num_programs(2)
    nk = pl.num_programs(3)

    # Fresh W_o accumulator at the start of each (batch, q-tile) slab.
    @pl.when((g == 0) & (ki == 0))
    def _init_out():
        out_scr[...] = jnp.zeros_like(out_scr)

    # Per head group: reset the online-softmax state.
    @pl.when(ki == 0)
    def _init_group():
        m_scr[...] = jnp.full_like(m_scr, -jnp.inf)
        l_scr[...] = jnp.zeros_like(l_scr)
        acc_scr[...] = jnp.zeros_like(acc_scr)

    qh = qp_ref[0]   # (G, tq, hd) bf16, 1/sqrt(hd) pre-folded into W_q
    kh = kp_ref[0]   # (G, tk, hd) bf16
    vh = vp_ref[0]   # (G, tk, hd) bf16

    # Batched scores over packed heads, contracting head_dim (no transpose).
    s = jnp.einsum('gqd,gkd->gqk', qh, kh, preferred_element_type=jnp.float32)

    # Online (flash-style) softmax; elementwise math kept in f32 (v5e-safe).
    m_prev = m_scr[...]
    m_new = jnp.maximum(m_prev, jnp.max(s, axis=-1, keepdims=True))
    alpha = jnp.exp(m_prev - m_new)
    p = jnp.exp(s - m_new)
    l_scr[...] = alpha * l_scr[...] + jnp.sum(p, axis=-1, keepdims=True)
    acc_scr[...] = alpha * acc_scr[...] + jnp.einsum(
        'gqk,gkd->gqd', p.astype(jnp.bfloat16), vh,
        preferred_element_type=jnp.float32)
    m_scr[...] = m_new

    # End of the K sweep for this head group: normalize and fold straight into
    # the W_o accumulator (no per-head attention output materialized in HBM).
    @pl.when(ki == nk - 1)
    def _finish_group():
        o_h = (acc_scr[...] * pl.reciprocal(l_scr[...], approx=True)
               ).astype(jnp.bfloat16)                                  # (G, tq, hd)
        contrib = jnp.einsum('gqd,gdm->gqm', o_h, wo_ref[...],
                             preferred_element_type=jnp.float32)       # (G, tq, D)
        out_scr[...] += jnp.sum(contrib, axis=0)

    # Last head group, last K tile: add the W_o bias and store the output tile.
    # (The output block index is constant over the two "arbitrary" axes, so
    #  Pallas only writes this block back once the slab completes.)
    @pl.when((g == ng - 1) & (ki == nk - 1))
    def _write():
        o_ref[0] = (out_scr[...] + bo_ref[...]).astype(o_ref.dtype)


# ---------------------------------------------------------------------------
# Host-side helpers (tiling / VMEM sizing).
# ---------------------------------------------------------------------------
def _vmem_capacity_bytes():
    try:
        return int(pltpu.get_tpu_info().vmem_capacity_bytes)
    except Exception:
        return 64 * 1024 * 1024   # conservative fallback (v7x per-TC VMEM)


def _pick_head_group(num_heads, head_dim):
    """Largest divisor of H with G*hd <= 512 (packs heads per grid step)."""
    target = max(1, 512 // max(head_dim, 1))
    g = 1
    for cand in range(1, num_heads + 1):
        if num_heads % cand == 0 and cand <= target:
            g = cand
    return g


def _pick_seq_tile(S, pref):
    if S <= pref:
        return S
    t = pref - (pref % 8)
    while t >= 8:
        if S % t == 0:
            return t
        t -= 8
    return S


def _attn_footprint_bytes(tq, tk, D, hd, G):
    bf, f32 = 2, 4
    dbl = 2   # Pallas double-buffers pipelined blocks
    inp = dbl * (G * tq * hd * bf + 2 * G * tk * hd * bf + G * hd * D * bf + D * f32)
    out = dbl * (tq * D * f32)
    scr = 2 * G * tq * 128 * f32 + G * tq * hd * f32 + tq * D * f32
    return inp + out + scr


# ---------------------------------------------------------------------------
# Public wrapper.
# ---------------------------------------------------------------------------
@functools.partial(jax.jit, static_argnames=("num_heads", "q_tile", "k_tile"))
def multi_head_attention(q, k, v, params, *, num_heads, q_tile=None, k_tile=None):
    """q, k, v: (N, S, D) float32. params: dict of pre-transposed weights."""
    N, S, D = q.shape
    assert k.shape == (N, S, D) and v.shape == (N, S, D)
    H = num_heads
    assert D % H == 0
    hd = D // H
    scale = 1.0 / math.sqrt(hd)

    cap = _vmem_capacity_bytes()
    G = _pick_head_group(H, hd)

    # Generation-aware sequence tiles: 512 on 128 MiB parts (v5e/v6e), 256
    # otherwise (v7x); shrink until the double-buffered footprint has headroom.
    pref = 512 if cap >= 96 * 1024 * 1024 else 256
    tq = q_tile if q_tile is not None else _pick_seq_tile(S, pref)
    tk = k_tile if k_tile is not None else tq
    while (tq > 8 and S % (tq // 2) == 0 and (tq // 2) % 8 == 0
           and _attn_footprint_bytes(tq, tk, D, hd, G) > int(0.45 * cap)):
        tq //= 2
        tk = tq
    assert S % tq == 0 and S % tk == 0, "sequence length must divide tiles"

    fp = _attn_footprint_bytes(tq, tk, D, hd, G)
    vmem_limit = max(32 * 1024 * 1024, 2 * fp)
    vmem_limit = min(vmem_limit, max(32 * 1024 * 1024, cap - 8 * 1024 * 1024))

    # Per-head weight slabs: (D, D) -> (H, D, hd) for the input projections,
    # (H, hd, D) for the output projection.  Fold the softmax scale into Wq;
    # all MXU operands in bf16 (f32 accumulation in-kernel).
    wq_h = (params["wq_t"] * scale).reshape(D, H, hd).transpose(1, 0, 2).astype(jnp.bfloat16)
    wk_h = params["wk_t"].reshape(D, H, hd).transpose(1, 0, 2).astype(jnp.bfloat16)
    wv_h = params["wv_t"].reshape(D, H, hd).transpose(1, 0, 2).astype(jnp.bfloat16)
    wo_h = params["wo_t"].reshape(H, hd, D).astype(jnp.bfloat16)
    bo = params["bo"].reshape(1, D).astype(jnp.float32)

    qb = q.astype(jnp.bfloat16)
    kb = k.astype(jnp.bfloat16)
    vb = v.astype(jnp.bfloat16)

    # ---- Pass 1: Q/K/V head projections (hoisted out of the attention grid).
    ts = tq
    proj_grid = (N, S // ts, H)
    x_spec = pl.BlockSpec((1, ts, D), lambda n, si, h: (n, si, 0))
    w_in_spec = pl.BlockSpec((1, D, hd), lambda n, si, h: (h, 0, 0))
    p_out_spec = pl.BlockSpec((1, 1, ts, hd), lambda n, si, h: (n, h, si, 0))
    proj_shape = jax.ShapeDtypeStruct((N, H, S, hd), jnp.bfloat16)

    qp, kp, vp = pl.pallas_call(
        _projection_kernel,
        out_shape=(proj_shape, proj_shape, proj_shape),
        grid_spec=pltpu.PrefetchScalarGridSpec(
            num_scalar_prefetch=0,
            grid=proj_grid,
            in_specs=[x_spec, x_spec, x_spec, w_in_spec, w_in_spec, w_in_spec],
            out_specs=[p_out_spec, p_out_spec, p_out_spec]),
        compiler_params=pltpu.CompilerParams(
            dimension_semantics=("parallel", "parallel", "arbitrary"),
            vmem_limit_bytes=vmem_limit),
    )(qb, kb, vb, wq_h, wk_h, wv_h)

    # ---- Pass 2: flash attention over head groups + fused output projection.
    attn_grid = (N, S // tq, H // G, S // tk)
    qp_spec = pl.BlockSpec((1, G, tq, hd), lambda n, qi, g, ki: (n, g, qi, 0))
    kv_spec = pl.BlockSpec((1, G, tk, hd), lambda n, qi, g, ki: (n, g, ki, 0))
    wo_spec = pl.BlockSpec((G, hd, D), lambda n, qi, g, ki: (g, 0, 0))
    bo_spec = pl.BlockSpec((1, D), lambda n, qi, g, ki: (0, 0))
    out_spec = pl.BlockSpec((1, tq, D), lambda n, qi, g, ki: (n, qi, 0))

    return pl.pallas_call(
        _attention_kernel,
        out_shape=jax.ShapeDtypeStruct((N, S, D), q.dtype),
        grid_spec=pltpu.PrefetchScalarGridSpec(
            num_scalar_prefetch=0,
            grid=attn_grid,
            in_specs=[qp_spec, kv_spec, kv_spec, wo_spec, bo_spec],
            out_specs=out_spec,
            scratch_shapes=[
                pltpu.VMEM((G, tq, 1), jnp.float32),    # running max m
                pltpu.VMEM((G, tq, 1), jnp.float32),    # running denom l
                pltpu.VMEM((G, tq, hd), jnp.float32),   # flash accumulator
                pltpu.VMEM((tq, D), jnp.float32),       # W_o accumulator
            ]),
        compiler_params=pltpu.CompilerParams(
            dimension_semantics=("parallel", "parallel",
                                 "arbitrary", "arbitrary"),
            vmem_limit_bytes=vmem_limit),
    )(qp, kp, vp, wo_h, bo)


# ---------------------------------------------------------------------------
# Pure-JAX f32 reference mirroring the PyTorch forward.
# ---------------------------------------------------------------------------
def reference_mha(q, k, v, params, num_heads):
    N, S, D = q.shape
    hd = D // num_heads
    qp = q @ params["wq_t"]
    kp = k @ params["wk_t"]
    vp = v @ params["wv_t"]
    qh = qp.reshape(N, S, num_heads, hd).transpose(0, 2, 1, 3)   # (N,H,S,hd)
    kh = kp.reshape(N, S, num_heads, hd).transpose(0, 2, 1, 3)   # (N,H,S,hd)
    vh = vp.reshape(N, S, num_heads, hd)                         # (N,S,H,hd)
    score = jnp.einsum("nhqd,nhkd->nhqk", qh, kh) / math.sqrt(hd)
    p = jax.nn.softmax(score, axis=-1)
    out = jnp.einsum("nhqk,nkhd->nqhd", p, vh).reshape(N, S, D)
    return out @ params["wo_t"] + params["bo"].reshape(1, D)


if __name__ == "__main__":
    N, S, D, H = 2, 8, 32, 4  # batch, seq, model_dim, num_heads

    key = jax.random.PRNGKey(0)
    keys = jax.random.split(key, 8)

    q = jax.random.normal(keys[0], (N, S, D), dtype=jnp.float32)
    k = jax.random.normal(keys[1], (N, S, D), dtype=jnp.float32)
    v = jax.random.normal(keys[2], (N, S, D), dtype=jnp.float32)

    # nn.Linear(D, D) weights: PyTorch W is (out, in); we store W.T = (in, out).
    init_scale = 1.0 / math.sqrt(D)
    params = {
        "wq_t": jax.random.uniform(keys[3], (D, D), jnp.float32,
                                   -init_scale, init_scale),
        "wk_t": jax.random.uniform(keys[4], (D, D), jnp.float32,
                                   -init_scale, init_scale),
        "wv_t": jax.random.uniform(keys[5], (D, D), jnp.float32,
                                   -init_scale, init_scale),
        "wo_t": jax.random.uniform(keys[6], (D, D), jnp.float32,
                                   -init_scale, init_scale),
        "bo": jax.random.uniform(keys[7], (1, D), jnp.float32,
                                 -init_scale, init_scale),
    }

    out = multi_head_attention(q, k, v, params, num_heads=H)
    out = jax.block_until_ready(out)

    ref = reference_mha(q, k, v, params, num_heads=H)
    assert out.shape == (N, S, D)
    # bf16 MXU operands (f32 accumulation) -> loosened tolerance vs f32 ref.
    assert jnp.allclose(out, ref, atol=5e-2, rtol=5e-2), "mismatch vs reference"

    print("KERNEL_OK")
</pallas_src>

<mosaic_0001>
module attributes {stable_mosaic.version = 11 : i64} {
  func.func @_projection_kernel(%arg0: i32, %arg1: i32, %arg2: i32, %arg3: memref<1x8x32xbf16, #tpu.memory_space<vmem>>, %arg4: memref<1x8x32xbf16, #tpu.memory_space<vmem>>, %arg5: memref<1x8x32xbf16, #tpu.memory_space<vmem>>, %arg6: memref<1x32x8xbf16, #tpu.memory_space<vmem>>, %arg7: memref<1x32x8xbf16, #tpu.memory_space<vmem>>, %arg8: memref<1x32x8xbf16, #tpu.memory_space<vmem>>, %arg9: memref<1x1x8x8xbf16, #tpu.memory_space<vmem>>, %arg10: memref<1x1x8x8xbf16, #tpu.memory_space<vmem>>, %arg11: memref<1x1x8x8xbf16, #tpu.memory_space<vmem>>) attributes {dimension_semantics = [#tpu.dimension_semantics<parallel>, #tpu.dimension_semantics<parallel>, #tpu.dimension_semantics<arbitrary>], iteration_bounds = array<i64: 2, 1, 4>, scalar_prefetch = 0 : i64, scratch_operands = 0 : i64, tpu.core_type = #tpu.core_type<tc>, window_params = [{transform_indices = @transform_0, window_bounds = array<i64: 1, 8, 32>}, {transform_indices = @transform_1, window_bounds = array<i64: 1, 8, 32>}, {transform_indices = @transform_2, window_bounds = array<i64: 1, 8, 32>}, {transform_indices = @transform_3, window_bounds = array<i64: 1, 32, 8>}, {transform_indices = @transform_4, window_bounds = array<i64: 1, 32, 8>}, {transform_indices = @transform_5, window_bounds = array<i64: 1, 32, 8>}, {transform_indices = @transform_6, window_bounds = array<i64: 1, 1, 8, 8>}, {transform_indices = @transform_7, window_bounds = array<i64: 1, 1, 8, 8>}, {transform_indices = @transform_8, window_bounds = array<i64: 1, 1, 8, 8>}]} {
    %c0 = arith.constant 0 : index
    %c0_0 = arith.constant 0 : index
    %c0_1 = arith.constant 0 : index
    %0 = vector.load %arg3[%c0, %c0_0, %c0_1] : memref<1x8x32xbf16, #tpu.memory_space<vmem>>, vector<1x8x32xbf16>
    %1 = vector.shape_cast %0 : vector<1x8x32xbf16> to vector<8x32xbf16>
    %c0_2 = arith.constant 0 : index
    %c0_3 = arith.constant 0 : index
    %c0_4 = arith.constant 0 : index
    %2 = vector.load %arg6[%c0_2, %c0_3, %c0_4] : memref<1x32x8xbf16, #tpu.memory_space<vmem>>, vector<1x32x8xbf16>
    %3 = vector.shape_cast %2 : vector<1x32x8xbf16> to vector<32x8xbf16>
    %cst = arith.constant dense<0.000000e+00> : vector<8x8xf32>
    %4 = tpu.matmul %1, %3, %cst {dimension_numbers = #tpu.dot_dimension_numbers<[1], [0], [0], [1], [0, 0, 1, 1], [], []>} : vector<8x32xbf16>, vector<32x8xbf16>, vector<8x8xf32> -> vector<8x8xf32>
    %5 = arith.truncf %4 : vector<8x8xf32> to vector<8x8xbf16>
    %c0_5 = arith.constant 0 : index
    %c0_6 = arith.constant 0 : index
    %c0_7 = arith.constant 0 : index
    %c0_8 = arith.constant 0 : index
    %6 = vector.load %arg9[%c0_5, %c0_6, %c0_7, %c0_8] : memref<1x1x8x8xbf16, #tpu.memory_space<vmem>>, vector<1x1x8x8xbf16>
    %7 = vector.shape_cast %6 : vector<1x1x8x8xbf16> to vector<8x8xbf16>
    %8 = vector.shape_cast %5 : vector<8x8xbf16> to vector<1x1x8x8xbf16>
    tpu.vector_store %arg9[%c0_5, %c0_6, %c0_7, %c0_8], %8 {strides = array<i32>} : memref<1x1x8x8xbf16, #tpu.memory_space<vmem>>, vector<1x1x8x8xbf16>,
    %c0_9 = arith.constant 0 : index
    %c0_10 = arith.constant 0 : index
    %c0_11 = arith.constant 0 : index
    %9 = vector.load %arg4[%c0_9, %c0_10, %c0_11] : memref<1x8x32xbf16, #tpu.memory_space<vmem>>, vector<1x8x32xbf16>
    %10 = vector.shape_cast %9 : vector<1x8x32xbf16> to vector<8x32xbf16>
    %c0_12 = arith.constant 0 : index
    %c0_13 = arith.constant 0 : index
    %c0_14 = arith.constant 0 : index
    %11 = vector.load %arg7[%c0_12, %c0_13, %c0_14] : memref<1x32x8xbf16, #tpu.memory_space<vmem>>, vector<1x32x8xbf16>
    %12 = vector.shape_cast %11 : vector<1x32x8xbf16> to vector<32x8xbf16>
    %cst_15 = arith.constant dense<0.000000e+00> : vector<8x8xf32>
    %13 = tpu.matmul %10, %12, %cst_15 {dimension_numbers = #tpu.dot_dimension_numbers<[1], [0], [0], [1], [0, 0, 1, 1], [], []>} : vector<8x32xbf16>, vector<32x8xbf16>, vector<8x8xf32> -> vector<8x8xf32>
    %14 = arith.truncf %13 : vector<8x8xf32> to vector<8x8xbf16>
    %c0_16 = arith.constant 0 : index
    %c0_17 = arith.constant 0 : index
    %c0_18 = arith.constant 0 : index
    %c0_19 = arith.constant 0 : index
    %15 = vector.load %arg10[%c0_16, %c0_17, %c0_18, %c0_19] : memref<1x1x8x8xbf16, #tpu.memory_space<vmem>>, vector<1x1x8x8xbf16>
    %16 = vector.shape_cast %15 : vector<1x1x8x8xbf16> to vector<8x8xbf16>
    %17 = vector.shape_cast %14 : vector<8x8xbf16> to vector<1x1x8x8xbf16>
    tpu.vector_store %arg10[%c0_16, %c0_17, %c0_18, %c0_19], %17 {strides = array<i32>} : memref<1x1x8x8xbf16, #tpu.memory_space<vmem>>, vector<1x1x8x8xbf16>,
    %c0_20 = arith.constant 0 : index
    %c0_21 = arith.constant 0 : index
    %c0_22 = arith.constant 0 : index
    %18 = vector.load %arg5[%c0_20, %c0_21, %c0_22] : memref<1x8x32xbf16, #tpu.memory_space<vmem>>, vector<1x8x32xbf16>
    %19 = vector.shape_cast %18 : vector<1x8x32xbf16> to vector<8x32xbf16>
    %c0_23 = arith.constant 0 : index
    %c0_24 = arith.constant 0 : index
    %c0_25 = arith.constant 0 : index
    %20 = vector.load %arg8[%c0_23, %c0_24, %c0_25] : memref<1x32x8xbf16, #tpu.memory_space<vmem>>, vector<1x32x8xbf16>
    %21 = vector.shape_cast %20 : vector<1x32x8xbf16> to vector<32x8xbf16>
    %cst_26 = arith.constant dense<0.000000e+00> : vector<8x8xf32>
    %22 = tpu.matmul %19, %21, %cst_26 {dimension_numbers = #tpu.dot_dimension_numbers<[1], [0], [0], [1], [0, 0, 1, 1], [], []>} : vector<8x32xbf16>, vector<32x8xbf16>, vector<8x8xf32> -> vector<8x8xf32>
    %23 = arith.truncf %22 : vector<8x8xf32> to vector<8x8xbf16>
    %c0_27 = arith.constant 0 : index
    %c0_28 = arith.constant 0 : index
    %c0_29 = arith.constant 0 : index
    %c0_30 = arith.constant 0 : index
    %24 = vector.load %arg11[%c0_27, %c0_28, %c0_29, %c0_30] : memref<1x1x8x8xbf16, #tpu.memory_space<vmem>>, vector<1x1x8x8xbf16>
    %25 = vector.shape_cast %24 : vector<1x1x8x8xbf16> to vector<8x8xbf16>
    %26 = vector.shape_cast %23 : vector<8x8xbf16> to vector<1x1x8x8xbf16>
    tpu.vector_store %arg11[%c0_27, %c0_28, %c0_29, %c0_30], %26 {strides = array<i32>} : memref<1x1x8x8xbf16, #tpu.memory_space<vmem>>, vector<1x1x8x8xbf16>,
    return
  }
  func.func @transform_0(%arg0: i32, %arg1: i32, %arg2: i32) -> (i32, i32, i32) {
    %c0_i32 = arith.constant 0 : i32
    %c0_i32_0 = arith.constant 0 : i32
    return %arg0, %arg1, %c0_i32 : i32, i32, i32
  }
  func.func @transform_1(%arg0: i32, %arg1: i32, %arg2: i32) -> (i32, i32, i32) {
    %c0_i32 = arith.constant 0 : i32
    %c0_i32_0 = arith.constant 0 : i32
    return %arg0, %arg1, %c0_i32 : i32, i32, i32
  }
  func.func @transform_2(%arg0: i32, %arg1: i32, %arg2: i32) -> (i32, i32, i32) {
    %c0_i32 = arith.constant 0 : i32
    %c0_i32_0 = arith.constant 0 : i32
    return %arg0, %arg1, %c0_i32 : i32, i32, i32
  }
  func.func @transform_3(%arg0: i32, %arg1: i32, %arg2: i32) -> (i32, i32, i32) {
    %c0_i32 = arith.constant 0 : i32
    %c0_i32_0 = arith.constant 0 : i32
    %c0_i32_1 = arith.constant 0 : i32
    return %arg2, %c0_i32, %c0_i32_0 : i32, i32, i32
  }
  func.func @transform_4(%arg0: i32, %arg1: i32, %arg2: i32) -> (i32, i32, i32) {
    %c0_i32 = arith.constant 0 : i32
    %c0_i32_0 = arith.constant 0 : i32
    %c0_i32_1 = arith.constant 0 : i32
    return %arg2, %c0_i32, %c0_i32_0 : i32, i32, i32
  }
  func.func @transform_5(%arg0: i32, %arg1: i32, %arg2: i32) -> (i32, i32, i32) {
    %c0_i32 = arith.constant 0 : i32
    %c0_i32_0 = arith.constant 0 : i32
    %c0_i32_1 = arith.constant 0 : i32
    return %arg2, %c0_i32, %c0_i32_0 : i32, i32, i32
  }
  func.func @transform_6(%arg0: i32, %arg1: i32, %arg2: i32) -> (i32, i32, i32, i32) {
    %c0_i32 = arith.constant 0 : i32
    %c0_i32_0 = arith.constant 0 : i32
    return %arg0, %arg2, %arg1, %c0_i32 : i32, i32, i32, i32
  }
  func.func @transform_7(%arg0: i32, %arg1: i32, %arg2: i32) -> (i32, i32, i32, i32) {
    %c0_i32 = arith.constant 0 : i32
    %c0_i32_0 = arith.constant 0 : i32
    return %arg0, %arg2, %arg1, %c0_i32 : i32, i32, i32, i32
  }
  func.func @transform_8(%arg0: i32, %arg1: i32, %arg2: i32) -> (i32, i32, i32, i32) {
    %c0_i32 = arith.constant 0 : i32
    %c0_i32_0 = arith.constant 0 : i32
    return %arg0, %arg2, %arg1, %c0_i32 : i32, i32, i32, i32
  }
}

module attributes {stable_mosaic.version = 11 : i64} {
  func.func @_attention_kernel(%arg0: i32, %arg1: i32, %arg2: i32, %arg3: i32, %arg4: memref<1x4x8x8xbf16, #tpu.memory_space<vmem>>, %arg5: memref<1x4x8x8xbf16, #tpu.memory_space<vmem>>, %arg6: memref<1x4x8x8xbf16, #tpu.memory_space<vmem>>, %arg7: memref<4x8x32xbf16, #tpu.memory_space<vmem>>, %arg8: memref<1x32xf32, #tpu.memory_space<vmem>>, %arg9: memref<1x8x32xf32, #tpu.memory_space<vmem>>, %arg10: memref<4x8x1xf32, #tpu.memory_space<vmem>>, %arg11: memref<4x8x1xf32, #tpu.memory_space<vmem>>, %arg12: memref<4x8x8xf32, #tpu.memory_space<vmem>>, %arg13: memref<8x32xf32, #tpu.memory_space<vmem>>) attributes {dimension_semantics = [#tpu.dimension_semantics<parallel>, #tpu.dimension_semantics<parallel>, #tpu.dimension_semantics<arbitrary>, #tpu.dimension_semantics<arbitrary>], iteration_bounds = array<i64: 2, 1, 1, 1>, scalar_prefetch = 0 : i64, scratch_operands = 4 : i64, tpu.core_type = #tpu.core_type<tc>, window_params = [{transform_indices = @transform_0, window_bounds = array<i64: 1, 4, 8, 8>}, {transform_indices = @transform_1, window_bounds = array<i64: 1, 4, 8, 8>}, {transform_indices = @transform_2, window_bounds = array<i64: 1, 4, 8, 8>}, {transform_indices = @transform_3, window_bounds = array<i64: 4, 8, 32>}, {pipeline_mode = #tpu.pipeline_mode<synchronous>, transform_indices = @transform_4, window_bounds = array<i64: 1, 32>}, {transform_indices = @transform_5, window_bounds = array<i64: 1, 8, 32>}]} {
    %c0_i32 = arith.constant 0 : i32
    %0 = arith.cmpi eq, %arg2, %c0_i32 : i32
    %c0_i32_0 = arith.constant 0 : i32
    %1 = arith.cmpi eq, %arg3, %c0_i32_0 : i32
    %2 = arith.andi %0, %1 : i1
    %3 = arith.extui %2 : i1 to i32
    %c0_i32_1 = arith.constant 0 : i32
    %4 = arith.cmpi ne, %3, %c0_i32_1 : i32
    scf.if %4 {
      %cst_41 = arith.constant 0.000000e+00 : f32
      %46 = vector.broadcast %cst_41 : f32 to vector<8x32xf32>
      %c0_42 = arith.constant 0 : index
      %c0_43 = arith.constant 0 : index
      %47 = vector.load %arg13[%c0_42, %c0_43] : memref<8x32xf32, #tpu.memory_space<vmem>>, vector<8x32xf32>
      tpu.vector_store %arg13[%c0_42, %c0_43], %46 {strides = array<i32>} : memref<8x32xf32, #tpu.memory_space<vmem>>, vector<8x32xf32>,
    } else {
    }
    %c0_i32_2 = arith.constant 0 : i32
    %5 = arith.cmpi eq, %arg3, %c0_i32_2 : i32
    %6 = arith.extui %5 : i1 to i32
    %c0_i32_3 = arith.constant 0 : i32
    %7 = arith.cmpi ne, %6, %c0_i32_3 : i32
    scf.if %7 {
      %cst_41 = arith.constant 0xFF800000 : f32
      %46 = vector.broadcast %cst_41 : f32 to vector<4x8x1xf32>
      %c0_42 = arith.constant 0 : index
      %c0_43 = arith.constant 0 : index
      %c0_44 = arith.constant 0 : index
      %47 = vector.load %arg10[%c0_42, %c0_43, %c0_44] : memref<4x8x1xf32, #tpu.memory_space<vmem>>, vector<4x8x1xf32>
      tpu.vector_store %arg10[%c0_42, %c0_43, %c0_44], %46 {strides = array<i32>} : memref<4x8x1xf32, #tpu.memory_space<vmem>>, vector<4x8x1xf32>,
      %cst_45 = arith.constant 0.000000e+00 : f32
      %48 = vector.broadcast %cst_45 : f32 to vector<4x8x1xf32>
      %c0_46 = arith.constant 0 : index
      %c0_47 = arith.constant 0 : index
      %c0_48 = arith.constant 0 : index
      %49 = vector.load %arg11[%c0_46, %c0_47, %c0_48] : memref<4x8x1xf32, #tpu.memory_space<vmem>>, vector<4x8x1xf32>
      tpu.vector_store %arg11[%c0_46, %c0_47, %c0_48], %48 {strides = array<i32>} : memref<4x8x1xf32, #tpu.memory_space<vmem>>, vector<4x8x1xf32>,
      %cst_49 = arith.constant 0.000000e+00 : f32
      %50 = vector.broadcast %cst_49 : f32 to vector<4x8x8xf32>
      %c0_50 = arith.constant 0 : index
      %c0_51 = arith.constant 0 : index
      %c0_52 = arith.constant 0 : index
      %51 = vector.load %arg12[%c0_50, %c0_51, %c0_52] : memref<4x8x8xf32, #tpu.memory_space<vmem>>, vector<4x8x8xf32>
      tpu.vector_store %arg12[%c0_50, %c0_51, %c0_52], %50 {strides = array<i32>} : memref<4x8x8xf32, #tpu.memory_space<vmem>>, vector<4x8x8xf32>,
    } else {
    }
    %c0 = arith.constant 0 : index
    %c0_4 = arith.constant 0 : index
    %c0_5 = arith.constant 0 : index
    %c0_6 = arith.constant 0 : index
    %8 = vector.load %arg4[%c0, %c0_4, %c0_5, %c0_6] : memref<1x4x8x8xbf16, #tpu.memory_space<vmem>>, vector<1x4x8x8xbf16>
    %9 = vector.shape_cast %8 : vector<1x4x8x8xbf16> to vector<4x8x8xbf16>
    %c0_7 = arith.constant 0 : index
    %c0_8 = arith.constant 0 : index
    %c0_9 = arith.constant 0 : index
    %c0_10 = arith.constant 0 : index
    %10 = vector.load %arg5[%c0_7, %c0_8, %c0_9, %c0_10] : memref<1x4x8x8xbf16, #tpu.memory_space<vmem>>, vector<1x4x8x8xbf16>
    %11 = vector.shape_cast %10 : vector<1x4x8x8xbf16> to vector<4x8x8xbf16>
    %c0_11 = arith.constant 0 : index
    %c0_12 = arith.constant 0 : index
    %c0_13 = arith.constant 0 : index
    %c0_14 = arith.constant 0 : index
    %12 = vector.load %arg6[%c0_11, %c0_12, %c0_13, %c0_14] : memref<1x4x8x8xbf16, #tpu.memory_space<vmem>>, vector<1x4x8x8xbf16>
    %13 = vector.shape_cast %12 : vector<1x4x8x8xbf16> to vector<4x8x8xbf16>
    "tpu.trace_start"() <{level = 10 : i32, message = "gqd,gkd->gqk"}> : () -> ()
    %cst = arith.constant dense<0.000000e+00> : vector<4x8x8xf32>
    %14 = tpu.matmul %9, %11, %cst {dimension_numbers = #tpu.dot_dimension_numbers<[2], [2], [1], [1], [0, 0, 0, 1, 1, 1], [0], [0]>} : vector<4x8x8xbf16>, vector<4x8x8xbf16>, vector<4x8x8xf32> -> vector<4x8x8xf32>
    "tpu.trace_stop"() : () -> ()
    %c0_15 = arith.constant 0 : index
    %c0_16 = arith.constant 0 : index
    %c0_17 = arith.constant 0 : index
    %15 = vector.load %arg10[%c0_15, %c0_16, %c0_17] : memref<4x8x1xf32, #tpu.memory_space<vmem>>, vector<4x8x1xf32>
    %cst_18 = arith.constant dense<0xFF800000> : vector<4x8xf32>
    %16 = vector.multi_reduction <maximumf>, %14, %cst_18 [2] : vector<4x8x8xf32> to vector<4x8xf32>
    %17 = vector.shape_cast %16 : vector<4x8xf32> to vector<4x8x1xf32>
    %18 = arith.maximumf %15, %17 : vector<4x8x1xf32>
    %19 = arith.subf %15, %18 : vector<4x8x1xf32>
    %20 = math.exp %19 : vector<4x8x1xf32>
    %21 = vector.broadcast %18 : vector<4x8x1xf32> to vector<4x8x8xf32>
    %22 = arith.subf %14, %21 : vector<4x8x8xf32>
    %23 = math.exp %22 : vector<4x8x8xf32>
    %c0_19 = arith.constant 0 : index
    %c0_20 = arith.constant 0 : index
    %c0_21 = arith.constant 0 : index
    %24 = vector.load %arg11[%c0_19, %c0_20, %c0_21] : memref<4x8x1xf32, #tpu.memory_space<vmem>>, vector<4x8x1xf32>
    %25 = arith.mulf %20, %24 : vector<4x8x1xf32>
    %cst_22 = arith.constant dense<0.000000e+00> : vector<4x8xf32>
    %26 = vector.multi_reduction <add>, %23, %cst_22 [2] : vector<4x8x8xf32> to vector<4x8xf32>
    %27 = vector.shape_cast %26 : vector<4x8xf32> to vector<4x8x1xf32>
    %28 = arith.addf %25, %27 : vector<4x8x1xf32>
    %c0_23 = arith.constant 0 : index
    %c0_24 = arith.constant 0 : index
    %c0_25 = arith.constant 0 : index
    %29 = vector.load %arg11[%c0_23, %c0_24, %c0_25] : memref<4x8x1xf32, #tpu.memory_space<vmem>>, vector<4x8x1xf32>
    tpu.vector_store %arg11[%c0_23, %c0_24, %c0_25], %28 {strides = array<i32>} : memref<4x8x1xf32, #tpu.memory_space<vmem>>, vector<4x8x1xf32>,
    %c0_26 = arith.constant 0 : index
    %c0_27 = arith.constant 0 : index
    %c0_28 = arith.constant 0 : index
    %30 = vector.load %arg12[%c0_26, %c0_27, %c0_28] : memref<4x8x8xf32, #tpu.memory_space<vmem>>, vector<4x8x8xf32>
    %31 = vector.broadcast %20 : vector<4x8x1xf32> to vector<4x8x8xf32>
    %32 = arith.mulf %31, %30 : vector<4x8x8xf32>
    %33 = arith.truncf %23 : vector<4x8x8xf32> to vector<4x8x8xbf16>
    "tpu.trace_start"() <{level = 10 : i32, message = "gqk,gkd->gqd"}> : () -> ()
    %cst_29 = arith.constant dense<0.000000e+00> : vector<4x8x8xf32>
    %34 = tpu.matmul %33, %13, %cst_29 {dimension_numbers = #tpu.dot_dimension_numbers<[2], [1], [1], [2], [0, 0, 0, 1, 1, 2], [0], [0]>} : vector<4x8x8xbf16>, vector<4x8x8xbf16>, vector<4x8x8xf32> -> vector<4x8x8xf32>
    "tpu.trace_stop"() : () -> ()
    %35 = arith.addf %32, %34 : vector<4x8x8xf32>
    %c0_30 = arith.constant 0 : index
    %c0_31 = arith.constant 0 : index
    %c0_32 = arith.constant 0 : index
    %36 = vector.load %arg12[%c0_30, %c0_31, %c0_32] : memref<4x8x8xf32, #tpu.memory_space<vmem>>, vector<4x8x8xf32>
    tpu.vector_store %arg12[%c0_30, %c0_31, %c0_32], %35 {strides = array<i32>} : memref<4x8x8xf32, #tpu.memory_space<vmem>>, vector<4x8x8xf32>,
    %c0_33 = arith.constant 0 : index
    %c0_34 = arith.constant 0 : index
    %c0_35 = arith.constant 0 : index
    %37 = vector.load %arg10[%c0_33, %c0_34, %c0_35] : memref<4x8x1xf32, #tpu.memory_space<vmem>>, vector<4x8x1xf32>
    tpu.vector_store %arg10[%c0_33, %c0_34, %c0_35], %18 {strides = array<i32>} : memref<4x8x1xf32, #tpu.memory_space<vmem>>, vector<4x8x1xf32>,
    %c0_i32_36 = arith.constant 0 : i32
    %38 = arith.cmpi eq, %arg3, %c0_i32_36 : i32
    %39 = arith.extui %38 : i1 to i32
    %c0_i32_37 = arith.constant 0 : i32
    %40 = arith.cmpi ne, %39, %c0_i32_37 : i32
    scf.if %40 {
      %c0_41 = arith.constant 0 : index
      %c0_42 = arith.constant 0 : index
      %c0_43 = arith.constant 0 : index
      %46 = vector.load %arg12[%c0_41, %c0_42, %c0_43] : memref<4x8x8xf32, #tpu.memory_space<vmem>>, vector<4x8x8xf32>
      %c0_44 = arith.constant 0 : index
      %c0_45 = arith.constant 0 : index
      %c0_46 = arith.constant 0 : index
      %47 = vector.load %arg11[%c0_44, %c0_45, %c0_46] : memref<4x8x1xf32, #tpu.memory_space<vmem>>, vector<4x8x1xf32>
      %48 = tpu.reciprocal %47 {approx = true} : vector<4x8x1xf32> -> vector<4x8x1xf32>
      %49 = vector.broadcast %48 : vector<4x8x1xf32> to vector<4x8x8xf32>
      %50 = arith.mulf %46, %49 : vector<4x8x8xf32>
      %51 = arith.truncf %50 : vector<4x8x8xf32> to vector<4x8x8xbf16>
      %c0_47 = arith.constant 0 : index
      %c0_48 = arith.constant 0 : index
      %c0_49 = arith.constant 0 : index
      %52 = vector.load %arg7[%c0_47, %c0_48, %c0_49] : memref<4x8x32xbf16, #tpu.memory_space<vmem>>, vector<4x8x32xbf16>
      "tpu.trace_start"() <{level = 10 : i32, message = "gqd,gdm->gqm"}> : () -> ()
      %cst_50 = arith.constant dense<0.000000e+00> : vector<4x8x32xf32>
      %53 = tpu.matmul %51, %52, %cst_50 {dimension_numbers = #tpu.dot_dimension_numbers<[2], [1], [1], [2], [0, 0, 0, 1, 1, 2], [0], [0]>} : vector<4x8x8xbf16>, vector<4x8x32xbf16>, vector<4x8x32xf32> -> vector<4x8x32xf32>
      "tpu.trace_stop"() : () -> ()
      %c0_51 = arith.constant 0 : index
      %c0_52 = arith.constant 0 : index
      %54 = vector.load %arg13[%c0_51, %c0_52] : memref<8x32xf32, #tpu.memory_space<vmem>>, vector<8x32xf32>
      %cst_53 = arith.constant dense<0.000000e+00> : vector<8x32xf32>
      %55 = vector.multi_reduction <add>, %53, %cst_53 [0] : vector<4x8x32xf32> to vector<8x32xf32>
      %56 = arith.addf %54, %55 : vector<8x32xf32>
      %c0_54 = arith.constant 0 : index
      %c0_55 = arith.constant 0 : index
      %57 = vector.load %arg13[%c0_54, %c0_55] : memref<8x32xf32, #tpu.memory_space<vmem>>, vector<8x32xf32>
      tpu.vector_store %arg13[%c0_54, %c0_55], %56 {strides = array<i32>} : memref<8x32xf32, #tpu.memory_space<vmem>>, vector<8x32xf32>,
    } else {
    }
    %c0_i32_38 = arith.constant 0 : i32
    %41 = arith.cmpi eq, %arg2, %c0_i32_38 : i32
    %c0_i32_39 = arith.constant 0 : i32
    %42 = arith.cmpi eq, %arg3, %c0_i32_39 : i32
    %43 = arith.andi %41, %42 : i1
    %44 = arith.extui %43 : i1 to i32
    %c0_i32_40 = arith.constant 0 : i32
    %45 = arith.cmpi ne, %44, %c0_i32_40 : i32
    scf.if %45 {
      %c0_41 = arith.constant 0 : index
      %c0_42 = arith.constant 0 : index
      %46 = vector.load %arg13[%c0_41, %c0_42] : memref<8x32xf32, #tpu.memory_space<vmem>>, vector<8x32xf32>
      %c0_43 = arith.constant 0 : index
      %c0_44 = arith.constant 0 : index
      %47 = vector.load %arg8[%c0_43, %c0_44] : memref<1x32xf32, #tpu.memory_space<vmem>>, vector<1x32xf32>
      %48 = vector.broadcast %47 : vector<1x32xf32> to vector<8x32xf32>
      %49 = arith.addf %46, %48 : vector<8x32xf32>
      %c0_45 = arith.constant 0 : index
      %c0_46 = arith.constant 0 : index
      %c0_47 = arith.constant 0 : index
      %50 = vector.load %arg9[%c0_45, %c0_46, %c0_47] : memref<1x8x32xf32, #tpu.memory_space<vmem>>, vector<1x8x32xf32>
      %51 = vector.shape_cast %50 : vector<1x8x32xf32> to vector<8x32xf32>
      %52 = vector.shape_cast %49 : vector<8x32xf32> to vector<1x8x32xf32>
      tpu.vector_store %arg9[%c0_45, %c0_46, %c0_47], %52 {strides = array<i32>} : memref<1x8x32xf32, #tpu.memory_space<vmem>>, vector<1x8x32xf32>,
    } else {
    }
    return
  }
  func.func @transform_0(%arg0: i32, %arg1: i32, %arg2: i32, %arg3: i32) -> (i32, i32, i32, i32) {
    %c0_i32 = arith.constant 0 : i32
    %c0_i32_0 = arith.constant 0 : i32
    return %arg0, %arg2, %arg1, %c0_i32 : i32, i32, i32, i32
  }
  func.func @transform_1(%arg0: i32, %arg1: i32, %arg2: i32, %arg3: i32) -> (i32, i32, i32, i32) {
    %c0_i32 = arith.constant 0 : i32
    %c0_i32_0 = arith.constant 0 : i32
    return %arg0, %arg2, %arg3, %c0_i32 : i32, i32, i32, i32
  }
  func.func @transform_2(%arg0: i32, %arg1: i32, %arg2: i32, %arg3: i32) -> (i32, i32, i32, i32) {
    %c0_i32 = arith.constant 0 : i32
    %c0_i32_0 = arith.constant 0 : i32
    return %arg0, %arg2, %arg3, %c0_i32 : i32, i32, i32, i32
  }
  func.func @transform_3(%arg0: i32, %arg1: i32, %arg2: i32, %arg3: i32) -> (i32, i32, i32) {
    %c0_i32 = arith.constant 0 : i32
    %c0_i32_0 = arith.constant 0 : i32
    %c0_i32_1 = arith.constant 0 : i32
    return %arg2, %c0_i32, %c0_i32_0 : i32, i32, i32
  }
  func.func @transform_4(%arg0: i32, %arg1: i32, %arg2: i32, %arg3: i32) -> (i32, i32) {
    %c0_i32 = arith.constant 0 : i32
    %c0_i32_0 = arith.constant 0 : i32
    %c0_i32_1 = arith.constant 0 : i32
    return %c0_i32, %c0_i32_0 : i32, i32
  }
  func.func @transform_5(%arg0: i32, %arg1: i32, %arg2: i32, %arg3: i32) -> (i32, i32, i32) {
    %c0_i32 = arith.constant 0 : i32
    %c0_i32_0 = arith.constant 0 : i32
    return %arg0, %arg1, %c0_i32 : i32, i32, i32
  }
}

</mosaic_0001>

<bundles_post_ra>
// kernel: multi_head_attention.2
= control target key start
LH: loop header
LB: loop body
LE: loop exit
PB: predicated region body
PF: predicated region fallthrough
CT: control target
= control target key end

     0   :  { %s1189_s27 = smov 0   ;;  %s1191_s28 = smov 0   ;;  %s1277_s0 = inlined_call_operand.vmem [shape: bf16[2,8,32], index: 0, kind: input, shape index: {}]   ;;  %s1278_s1 = inlined_call_operand.vmem [shape: bf16[2,8,32], index: 1, kind: input, shape index: {}]   ;;  %s1279_s2 = inlined_call_operand.vmem [shape: bf16[2,8,32], index: 2, kind: input, shape index: {}]   ;;  %s1280_s3 = inlined_call_operand.vmem [shape: bf16[4,32,8], index: 3, kind: input, shape index: {}]   ;;  %s1281_s4 = inlined_call_operand.vmem [shape: bf16[4,32,8], index: 4, kind: input, shape index: {}]   ;;  %s1282_s5 = inlined_call_operand.vmem [shape: bf16[4,32,8], index: 5, kind: input, shape index: {}]   ;;  %s1283_s6 = inlined_call_operand.vmem [shape: bf16[2,4,8,8], index: 6, kind: output, shape index: {0}]   ;;  %s1284_s7 = inlined_call_operand.vmem [shape: bf16[2,4,8,8], index: 7, kind: output, shape index: {1}]   ;;  %s1285_s8 = inlined_call_operand.vmem [shape: bf16[2,4,8,8], index: 8, kind: output, shape index: {2}]  }
   0x1   :  { %s1193_s29 = smov 0   ;;  %s1195_s30 = smov 0  }
   0x2   :  { %s1197_s9 = smov 0  }
   0x3 LB: > { %s31_s10 = sadd.s32 1, %s1132_s29  ;;  %s38_s11 = sadd.s32 1, %s1136_s30  ;;  %s1140_s9 = sphi %s1197_s9, %s19_s9   ;;  %s1136_s30 = sphi %s1195_s30, %s1289_s30   ;;  %s1132_s29 = sphi %s1193_s29, %s1288_s29   ;;  %s1128_s28 = sphi %s1191_s28, %s1287_s28   ;;  %s1124_s27 = sphi %s1189_s27, %s1286_s27  }
   0x4   : > { %p32_p0 = scmp.ge.s32.totalorder %s31_s10, 4  ;;  %p991_p1 = scmp.ge.s32.totalorder %s1140_s9, 1 }
   0x5   : > { %p360_p2 = scmp.lt.s32.totalorder %s1140_s9, 9 }
   0x6   : > { %s1291_s10 = smov (%p32_p0, %s31_s10), 0  ;;  %s1293_s11 = smov (!%p32_p0, %s38_s11), %s1136_s30 }
   0x7   : > { %p361_p3 = pnand %p991_p1, %p360_p2  ;;  %p40_p4 = scmp.ge.s32.totalorder %s1293_s11, 2 }
   0x8   : > { %p474_p5 = scmp.lt.s32.totalorder (!%p361_p3), %s1124_s27, 3  ;;  %p453_p6 = scmp.lt.s32.totalorder (!%p361_p3), %s1128_s28, 1  ;;  %v1142_v0 = vmov (!%p361_p3), 0.0   ;;  %vm1143_vm0 = vmmov (!%p361_p3), 0   ;;  %vm540_vm1 = vcmask (!%p361_p3), 261120   ;;  %vm585_vm2 = vcmask (!%p361_p3), 60416  }
   0x9   : > { %s1295_s11 = smov (%p40_p4, %s1293_s11), 0  ;;  %364 = sbr.rel (%p361_p3) target bundleno = 250 (0xfa), region = 44 }
   0xa   : > { %1030 = vmatprep.subr.bf16.mxu0 (!%p361_p3), %v1142_v0  ;;  %1038 = vmatprep.subr.bf16.mxu1 (!%p361_p3), %v1142_v0 }
   0xb   : > { %1034 = vmatprep.mubr.msk.bf16.mxu0 (!%p361_p3), %vm1143_vm0, %v1142_v0  ;;  %1042 = vmatprep.mubr.msk.bf16.mxu1 (!%p361_p3), %vm1143_vm0, %v1142_v0 }
  0x10   : > { %s1297_s27 = smov (!%p474_p5, %s1124_s27), 3  ;;  %s1299_s28 = smov (!%p453_p6, %s1128_s28), 1 }
  0x11   : > { %s1018_s12 = sshll.u32 %s1297_s27, 4  ;;  %s1230_s19 = sshll.u32 %s1299_s28, 2 }
  0x12   : > { %s478_s15 = scalar_lea.vmem %s1280_s3, %s1018_s12  ;;  %s483_s18 = scalar_lea.vmem %s1281_s4, %s1018_s12 }
  0x13   : > { %v1096_v1 = vld [vmem:[%s478_s15] sm:$0xff]   ;;  %v1097_v2 = vld [vmem:[%s478_s15 + $0x8] sm:$0xff]   ;;  %s488_s22 = scalar_lea.vmem %s1282_s5, %s1018_s12  ;;  %s497_s23 = sadd.s32 %s1230_s19, %s1297_s27 }
  0x14   : > { %1031 = vmatpush3.bf16.msra.mxu0 %v1096_v1  ;;  %v1098_v3 = vld [vmem:[%s483_s18] sm:$0xff]   ;;  %s459_s26 = scalar_lea.vmem %s1277_s0, %s1230_s19  ;;  %v1100_v4 = vld [vmem:[%s483_s18 + $0x8] sm:$0xff]   ;;  %s466_s14 = scalar_lea.vmem %s1278_s1, %s1230_s19 }
  0x15   : > { %1032 = vmatprep.subr.bf16.mxu0 %v1142_v0  ;;  %1039 = vmatpush3.bf16.msra.mxu1 %v1098_v3  ;;  %v523_v5 = vld [vmem:[%s459_s26] sm:$0xf]  ;;  %v1101_v8 = vld [vmem:[%s488_s22 + $0x8] sm:$0xff]   ;;  %s473_s15 = scalar_lea.vmem %s1279_s2, %s1230_s19  ;;  %s1002_s16 = sshll.u32 %s497_s23, 2 }
  0x16   : > { %1040 = vmatprep.subr.bf16.mxu1 %v1142_v0  ;;  %v1099_v6 = vld [vmem:[%s488_s22] sm:$0xff]   ;;  %s499_s20 = scalar_lea.vmem %s1283_s6, %s1002_s16  ;;  %s510_s24 = scalar_lea.vmem %s1284_s7, %s1002_s16 }
  0x17   : > { %v587_v7 = vld [vmem:[%s466_s14] sm:$0xf]  ;;  %s521_s25 = scalar_lea.vmem %s1285_s8, %s1002_s16 }
  0x18   : > { %1033 = vmatpush3.bf16.msra.mxu0 %v1097_v2  ;;  %v649_v9 = vld [vmem:[%s473_s15] sm:$0xf] }
  0x19   : > { %1046 = vmatprep.subr.bf16.mxu0 %v1142_v0  ;;  %1041 = vmatpush3.bf16.msra.mxu1 %v1100_v4 }
  0x1b   : > { %1035 = vmatmul.mubr.msk.bf16.vlgmr.msra.gmra.mrb[0].mxu0 %vm540_vm1, %v523_v5 }
  0x1c   : > { %1047 = vmatpush3.bf16.msra.mxu0 %v1099_v6  ;;  %1050 = vmatprep.mubr.msk.bf16.mxu0 %vm1143_vm0, %v1142_v0 }
  0x1d   : > { %1048 = vmatprep.subr.bf16.mxu0 %v1142_v0  ;;  %1043 = vmatmul.mubr.msk.bf16.vlgmr.msra.gmra.mrb[0].mxu1 %vm540_vm1, %v587_v7 }
  0x20   : > { %1049 = vmatpush3.bf16.msra.mxu0 %v1101_v8 }
  0x23   : > { %1051 = vmatmul.mubr.msk.bf16.vlgmr.msra.gmra.mrb[4].mxu0 %vm540_vm1, %v649_v9 }
  0xee   : > { %v578_v10 = vpop.f32.mrb[0].mxu0 }
  0xef   : > { %v584_v11 = vpack.c.bf16 %v578_v10, %v578_v10  ;;  %v1036_v12 = vpop.f32.mrb[1].mxu0 }
  0xf0   : > { %v581_v13 = vpop.f32.mrb[2].mxu0  ;;  %v641_v14 = vpop.f32.mrb[0].mxu1 }
  0xf1   : > { %586 = vst.msk [vmem:[%s499_s20] sm:$0xf] %vm585_vm2, %v584_v11  ;;  %v1037_v15 = vpop.f32.mrb[3].mxu0  ;;  %v647_v16 = vpack.c.bf16 %v641_v14, %v641_v14  ;;  %v1044_v17 = vpop.f32.mrb[1].mxu1 }
  0xf2   : > { %v644_v18 = vpop.f32.mrb[2].mxu1 }
  0xf3   : > { %648 = vst.msk [vmem:[%s510_s24] sm:$0xf] %vm585_vm2, %v647_v16  ;;  %v1045_v19 = vpop.f32.mrb[3].mxu1 }
  0xf6   : > { %v703_v20 = vpop.f32.mrb[4].mxu0 }
  0xf7   : > { %v709_v21 = vpack.c.bf16 %v703_v20, %v703_v20  ;;  %v1052_v22 = vpop.f32.mrb[5].mxu0 }
  0xf8   : > { %v706_v23 = vpop.f32.mrb[6].mxu0 }
  0xf9   : > { %710 = vst.msk [vmem:[%s521_s25] sm:$0xf] %vm585_vm2, %v709_v21  ;;  %v1053_v24 = vpop.f32.mrb[7].mxu0 }
  0xfa PF: > { %s19_s9 = sadd.s32 1, %s1140_s9   ;;  %s1286_s27 = smov %s1132_s29 }
  0xfb   : > { %p16_p7 = scmp.ge.s32.totalorder %s19_s9, 10   ;;  %s1287_s28 = smov %s1136_s30 }
  0xfc   : > { %s1288_s29 = smov %s1291_s10  ;;  %s1289_s30 = smov %s1295_s11 }
  0xfd   :  { %18 = sbr.rel (!%p16_p7) target bundleno = 3 (0x3), region = 113 }

// kernel: multi_head_attention.3
= control target key start
LH: loop header
LB: loop body
LE: loop exit
PB: predicated region body
PF: predicated region fallthrough
CT: control target
= control target key end

     0   :  { %10 = vsyncpa [#allocation7], 0  ;;  %s1990_s0 = inlined_call_operand.vmem [shape: bf16[2,4,8,8], index: 0, kind: input, shape index: {}]   ;;  %s1991_s1 = inlined_call_operand.vmem [shape: bf16[2,4,8,8], index: 1, kind: input, shape index: {}]   ;;  %s1992_s2 = inlined_call_operand.vmem [shape: bf16[2,4,8,8], index: 2, kind: input, shape index: {}]   ;;  %s1993_s3 = inlined_call_operand.vmem [shape: bf16[4,8,32], index: 3, kind: input, shape index: {}]   ;;  %s1994_s4 = inlined_call_operand.vmem [shape: f32[1,32], index: 4, kind: input, shape index: {}]   ;;  %s1995_s5 = inlined_call_operand.hbm [shape: f32[2,8,32], index: 5, kind: output, shape index: {}]  }
   0x1   :  { %12 = vsyncpa [#allocation7 + $0x1], 0  ;;  %s1678_s18 = smov 0   ;;  %s1680_s19 = smov 0  }
   0x2   :  { %s1682_s20 = smov 0   ;;  %s1684_s21 = smov 0  }
   0x3   :  { %s1686_s22 = smov 0   ;;  %s1688_s23 = smov 0  }
   0x4 LB: > { %s1349_s24 = sadd.s32 4294967295, %s1641_s23   ;;  %s1350_s25 = sadd.s32 4294967294, %s1641_s23   ;;  %s1641_s23 = sphi %s1688_s23, %s18_s23   ;;  %s1637_s22 = sphi %s1686_s22, %s2002_s22   ;;  %s1633_s21 = sphi %s1684_s21, %s2001_s21   ;;  %s1629_s20 = sphi %s1682_s20, %s2000_s20   ;;  %s1625_s19 = sphi %s1680_s19, %s1999_s19   ;;  %s1621_s18 = sphi %s1678_s18, %s1998_s18  }
   0x5   : > { %s44_s26 = sadd.s32 1, %s1637_s22  ;;  %s190_s27 = sadd.s32 1, %s1629_s20 }
   0x6   : > { %p46_p0 = scmp.ge.s32.totalorder %s44_s26, 2  ;;  %p200_p1 = scmp.ne.s32.totalorder %s1629_s20, %s1625_s19 }
   0x7   : > { %p201_p2 = scmp.eq.s32.totalorder %s1349_s24, 1  ;;  %p206_p3 = scmp.ne.s32.totalorder %s1625_s19, %s1621_s18 }
   0x8   : > { %s2004_s26 = smov (%p46_p0, %s44_s26), 0  ;;  %p207_p5 = scmp.eq.s32.totalorder %s1350_s25, 1 }
   0x9   : > { %p1718_p4 = por %p201_p2, %p200_p1  ;;  %s185_s29 = ssub.s32 %s1637_s22, %s2004_s26 }
   0xa   : > { %p1354_p6 = scmp.ge.s32.totalorder %s1641_s23, 1  ;;  %p188_p7 = scmp.eq.s32.totalorder %s185_s29, 0 }
   0xb   : > { %p1725_p8 = por %p207_p5, %p206_p3  ;;  %p285_p9 = scmp.lt.s32.totalorder %s1641_s23, 3 }
   0xc   : > { %s1731_s6 = scalar_select %p188_p7, %s1629_s20, %s190_s27  }
   0xd   : > { %p286_p10 = pnand %p1354_p6, %p285_p9 }
   0xe   : > { %p350_p11 = scmp.lt.s32.totalorder (!%p286_p10), %s1633_s21, 1  ;;  %vm415_vm0 = vcmask (!%p286_p10), 64512   ;;  %v1643_v0 = vmov (!%p286_p10), 0.0   ;;  %vm1644_vm1 = vmmov (!%p286_p10), 0   ;;  %vm406_vm2 = vcmask (!%p286_p10), 7168   ;;  %s1376_s15 = sshll.u32 (!%p286_p10), %s1633_s21, 7 }
   0xf   : > { %289 = sbr.rel (%p286_p10) target bundleno = 1084 (0x43c), region = 40  ;;  %1406 = vmatprep.subr.bf16.mxu0 (!%p286_p10), %v1643_v0  ;;  %416 = vst.msk [vmem:[#allocation4] sm:$0xff] (!%p286_p10), %vm415_vm0, %v1643_v0  ;;  %417 = vst.msk [vmem:[#allocation4 + $0x8] sm:$0xff] (!%p286_p10), %vm415_vm0, %v1643_v0  ;;  %1412 = vmatprep.subr.bf16.mxu1 (!%p286_p10), %v1643_v0  ;;  %v1645_v13 = vmov (!%p286_p10), -inf   ;;  %v1646_v34 = vmov (!%p286_p10), 0   ;;  %vm745_vm3 = vcmask (!%p286_p10), 1043456   ;;  %s1942_s27 = scalar_lea.hbm (!%p286_p10), %s1995_s5, %s1376_s15 }
  0x10   : > { %418 = vst.msk [vmem:[#allocation4 + $0x10] sm:$0xff] (!%p286_p10), %vm415_vm0, %v1643_v0  ;;  %419 = vst.msk [vmem:[#allocation4 + $0x18] sm:$0xff] (!%p286_p10), %vm415_vm0, %v1643_v0  ;;  %1408 = vmatprep.mubr.msk.bf16.mxu0 (!%p286_p10), %vm1644_vm1, %v1643_v0  ;;  %1414 = vmatprep.mubr.msk.bf16.mxu1 (!%p286_p10), %vm1644_vm1, %v1643_v0  ;;  %vm401_vm4 = vcmask (!%p286_p10), 261120  }
  0x11   : > { %407 = vst.msk [vmem:[#allocation2] sm:$0xff] (!%p286_p10), %vm406_vm2, %v1645_v13  ;;  %408 = vst.msk [vmem:[#allocation2 + $0x8] sm:$0xff] (!%p286_p10), %vm406_vm2, %v1645_v13  ;;  %1537 = vset.pattern.permute.xlu0 (!%p286_p10), %v1646_v34  ;;  %1538 = vset.pattern.permute.xlu1 (!%p286_p10), %v1646_v34 }
  0x12   : > { %409 = vst.msk [vmem:[#allocation2 + $0x10] sm:$0xff] (!%p286_p10), %vm406_vm2, %v1645_v13  ;;  %410 = vst.msk [vmem:[#allocation2 + $0x18] sm:$0xff] (!%p286_p10), %vm406_vm2, %v1645_v13 }
  0x13   : > { %411 = vst.msk [vmem:[#allocation3] sm:$0xff] (!%p286_p10), %vm406_vm2, %v1643_v0  ;;  %412 = vst.msk [vmem:[#allocation3 + $0x8] sm:$0xff] (!%p286_p10), %vm406_vm2, %v1643_v0 }
  0x14   : > { %413 = vst.msk [vmem:[#allocation3 + $0x10] sm:$0xff] (!%p286_p10), %vm406_vm2, %v1643_v0  ;;  %414 = vst.msk [vmem:[#allocation3 + $0x18] sm:$0xff] (!%p286_p10), %vm406_vm2, %v1643_v0 }
  0x15   : > { %402 = vst.msk [vmem:[#allocation5] sm:$0xff] (!%p286_p10), %vm401_vm4, %v1643_v0 }
  0x16   : > { %s351_s7 = scalar_select %p350_p11, %s1633_s21, 1 }
  0x17   : > { %s1647_s21 = smov [#allocation6]  }
  0x18   : > { %s1749_s8 = sshll.u32 %s351_s7, 4  ;;  %v1804_v35 = vld [vmem:[#allocation2] sm:$0xff]  ;;  %v1809_v38 = vld [vmem:[#allocation2 + $0x8] sm:$0xff] }
  0x19   : > { %s373_s11 = scalar_lea.vmem %s1991_s1, %s1749_s8  ;;  %s360_s14 = scalar_lea.vmem %s1990_s0, %s1749_s8  ;;  %v1819_v42 = vld [vmem:[#allocation2 + $0x10] sm:$0xff]  ;;  %v1829_v46 = vld [vmem:[#allocation2 + $0x18] sm:$0xff] }
  0x1a   : > { %v424_v1 = vld [vmem:[%s373_s11] sm:$0xf]  ;;  %v425_v2 = vld [vmem:[%s373_s11 + $0x4] sm:$0xf]  ;;  %v426_v5 = vld [vmem:[%s373_s11 + $0x8] sm:$0xf]  ;;  %s1843_s17 = scalar_lea.vmem %s1992_s2, %s1749_s8 }
  0x1b   : > { %v437_v3 = vsel %vm415_vm0, %v424_v1, 0  ;;  %v483_v4 = vsel %vm415_vm0, %v425_v2, 0  ;;  %v427_v6 = vld [vmem:[%s373_s11 + $0xc] sm:$0xf]  ;;  %v420_v7 = vld [vmem:[%s360_s14] sm:$0xf] }
  0x1c   : > { %1407 = vmatpush3.bf16.xpose.msra.mxu0 %v437_v3  ;;  %1413 = vmatpush3.bf16.xpose.msra.mxu1 %v483_v4  ;;  %v421_v8 = vld [vmem:[%s360_s14 + $0x4] sm:$0xf]  ;;  %v529_v9 = vsel %vm415_vm0, %v426_v5, 0  ;;  %v575_v10 = vsel %vm415_vm0, %v427_v6, 0  ;;  %v422_v11 = vld [vmem:[%s360_s14 + $0x8] sm:$0xf] }
  0x1d   : > { %1418 = vmatprep.subr.bf16.mxu0 %v1643_v0  ;;  %1424 = vmatprep.subr.bf16.mxu1 %v1643_v0  ;;  %v423_v12 = vld [vmem:[%s360_s14 + $0xc] sm:$0xf]  ;;  %v428_v51 = vld [vmem:[%s1843_s17] sm:$0xf]  ;;  %v429_v53 = vld [vmem:[%s1843_s17 + $0x4] sm:$0xf] }
  0x1e   : > { %v747_v52 = vsel %vm745_vm3, %v428_v51, 0  ;;  %v793_v54 = vsel %vm745_vm3, %v429_v53, 0  ;;  %v430_v3 = vld [vmem:[%s1843_s17 + $0x8] sm:$0xf]  ;;  %v983_v51 = vld [vmem:[%s1993_s3 + $0x4] sm:$0xf] }
  0x1f   : > { %v1036_v53 = vsel %vm745_vm3, %v983_v51, 0  ;;  %s346_s11 = sand.u32 1, %s1625_s19   ;;  %s1567_s8 = sshll.u32 %s1647_s21, 4  ;;  %s1568_s8 = int_to_ptr.vmem [resolvable:$false] %s1567_s8 }
  0x20   : > { %s1355_s12 = sshll.u32 %s346_s11, 3  ;;  %s1195_s29 = scalar_lea.sflag [#allocation7], %s346_s11 }
  0x21   : > { %s348_s16 = scalar_lea.vmem [#allocation6], %s1355_s12  ;;  %s1569_s9 = scalar_lea.vmem %s1568_s8, 256 }
  0x23   : > { %1409 = vmatmul.mubr.msk.bf16.vlgmr.msra.gmra.mrb[0].mxu0 %vm415_vm0, %v420_v7  ;;  %1415 = vmatmul.mubr.msk.bf16.vlgmr.msra.gmra.mrb[0].mxu1 %vm415_vm0, %v421_v8  ;;  %v839_v8 = vsel %vm745_vm3, %v430_v3, 0 }
  0x24   : > { %1419 = vmatpush3.bf16.xpose.msra.mxu0 %v529_v9  ;;  %1425 = vmatpush3.bf16.xpose.msra.mxu1 %v575_v10  ;;  %v431_v9 = vld [vmem:[%s1843_s17 + $0xc] sm:$0xf]  ;;  %s1209_s17 = sshll.u32 %s348_s16, 4  ;;  %s1944_s17 = int_to_ptr.vmem [resolvable:$true] %s1209_s17 }
  0x25   : > { %1420 = vmatprep.mubr.msk.bf16.mxu0 %vm1644_vm1, %v1643_v0  ;;  %1426 = vmatprep.mubr.msk.bf16.mxu1 %vm1644_vm1, %v1643_v0  ;;  %v885_v13 = vsel %vm745_vm3, %v431_v9, 0  ;;  %s1563_s7 = scalar_lea.vmem %s1944_s17, 128  ;;  %p1570_p1 = scmp.lt.s32.totalorder %s1944_s17, %s1568_s8 }
  0x26   : > { %1430 = vmatprep.subr.bf16.mxu0 %v1643_v0  ;;  %1436 = vmatprep.subr.bf16.mxu1 %v1643_v0  ;;  %p1564_p12 = scmp.ne.s32.totalorder %s1944_s17, %s1563_s7  ;;  %p1571_p2 = scmp.lt.s32.totalorder %s1569_s9, %s1563_s7 }
  0x28   : > { %p1565_p13 = pnand %p1564_p12, %p1718_p4  ;;  %p1572_p3 = por %p1571_p2, %p1570_p1 }
  0x2a   : > { %p1566_p0 = pneg %p1565_p13 }
  0x2b   : > { %1421 = vmatmul.mubr.msk.bf16.vlgmr.msra.gmra.mrb[4].mxu0 %vm415_vm0, %v422_v11  ;;  %1427 = vmatmul.mubr.msk.bf16.vlgmr.msra.gmra.mrb[4].mxu1 %vm415_vm0, %v423_v12 }
  0x2c   : > { %1432 = vmatprep.mubr.msk.bf16.mxu0 %vm1644_vm1, %v1643_v0  ;;  %1438 = vmatprep.mubr.msk.bf16.mxu1 %vm1644_vm1, %v1643_v0  ;;  %p1573_p5 = pnand %p1572_p3, %p1566_p0 }
  0x2d   : > { %1431 = vmatpush3.bf16.msra.mxu0 %v747_v52  ;;  %1437 = vmatpush3.bf16.msra.mxu1 %v793_v54 }
  0x2e   : > { %1442 = vmatprep.subr.bf16.mxu0 %v1643_v0  ;;  %1448 = vmatprep.subr.bf16.mxu1 %v1643_v0 }
  0xf6   : > { %v1791_v14 = vpop.f32.mrb[0].mxu0  ;;  %v1793_v15 = vpop.f32.mrb[0].mxu1 }
  0xf7   : > { %v1410_v16 = vpop.f32.mrb[1].mxu0  ;;  %v621_v17 = vsel %vm415_vm0, %v1791_v14, -inf  ;;  %v1416_v18 = vpop.f32.mrb[1].mxu1  ;;  %v624_v23 = vsel %vm415_vm0, %v1793_v15, -inf }
  0xf8   : > { %622 = vmax.xlane.f32.xlu0 %v621_v17  ;;  %v476_v19 = vpop.f32.mrb[2].mxu0  ;;  %v522_v20 = vpop.f32.mrb[2].mxu1 }
  0xf9   : > { %v1411_v21 = vpop.f32.mrb[3].mxu0  ;;  %v1417_v22 = vpop.f32.mrb[3].mxu1 }
  0xfc   : > { %625 = vmax.xlane.f32.xlu0 %v624_v23 }
  0xfe   : > { %v565_v24 = vpop.f32.mrb[4].mxu0  ;;  %v1799_v25 = vpop.f32.mrb[4].mxu1 }
  0xff   : > { %v1422_v26 = vpop.f32.mrb[5].mxu0  ;;  %v627_v27 = vsel %vm415_vm0, %v565_v24, -inf  ;;  %v1428_v28 = vpop.f32.mrb[5].mxu1  ;;  %v630_v33 = vsel %vm415_vm0, %v1799_v25, -inf }
 0x100   : > { %628 = vmax.xlane.f32.xlu1 %v627_v27  ;;  %v568_v29 = vpop.f32.mrb[6].mxu0  ;;  %v614_v30 = vpop.f32.mrb[6].mxu1  ;;  %v982_v28 = vld [vmem:[%s1993_s3] sm:$0xf] }
 0x101   : > { %v1423_v31 = vpop.f32.mrb[7].mxu0  ;;  %v1429_v32 = vpop.f32.mrb[7].mxu1  ;;  %v990_v29 = vsel %vm745_vm3, %v982_v28, 0  ;;  %v681_v30 = vld [vmem:[#allocation3] sm:$0xff] }
 0x104   : > { %631 = vmax.xlane.f32.xlu1 %v630_v33  ;;  %v682_v33 = vld [vmem:[#allocation3 + $0x8] sm:$0xff] }
 0x185   : > { %v623_v36 = vpop.xlane.xlu0 %622 }
 0x186   : > { %v1807_v37 = vmax.f32 %v1804_v35, %v623_v36 }
 0x188   : > { %v637_v39 = vsub.f32 %v1804_v35, %v1807_v37  ;;  %935 = vst.msk [vmem:[#allocation2] sm:$0xff] %vm406_vm2, %v1807_v37  ;;  %651 = vperm.xlu0 %1537, %v1807_v37   ;;  %v683_v37 = vld [vmem:[#allocation3 + $0x10] sm:$0xff] }
 0x189   : > { %v626_v40 = vpop.xlane.xlu0 %625 }
 0x18a   : > { %v1817_v41 = vmax.f32 %v1809_v38, %v626_v40  ;;  %v641_v21 = vmul.f32 1.442695, %v637_v39 }
 0x18c   : > { %v638_v43 = vsub.f32 %v1809_v38, %v1817_v41  ;;  %936 = vst.msk [vmem:[#allocation2 + $0x8] sm:$0xff] %vm406_vm2, %v1817_v41  ;;  %656 = vperm.xlu1 %1538, %v1817_v41   ;;  %v684_v41 = vld [vmem:[#allocation3 + $0x18] sm:$0xff] }
 0x18d   : > { %v629_v44 = vpop.xlane.xlu1 %628 }
 0x18e   : > { %v1827_v45 = vmax.f32 %v1819_v42, %v629_v44  ;;  %v643_v18 = vmul.f32 1.442695, %v638_v43 }
 0x190   : > { %v639_v47 = vsub.f32 %v1819_v42, %v1827_v45  ;;  %937 = vst.msk [vmem:[#allocation2 + $0x10] sm:$0xff] %vm406_vm2, %v1827_v45  ;;  %661 = vperm.xlu1 %1538, %v1827_v45  }
 0x191   : > { %v632_v48 = vpop.xlane.xlu1 %631 }
 0x192   : > { %v1837_v49 = vmax.f32 %v1829_v46, %v632_v48  ;;  %v645_v22 = vmul.f32 1.442695, %v639_v47 }
 0x194   : > { %v640_v50 = vsub.f32 %v1829_v46, %v1837_v49  ;;  %938 = vst.msk [vmem:[#allocation2 + $0x18] sm:$0xff] %vm406_vm2, %v1837_v49  ;;  %666 = vperm.xlu1 %1538, %v1837_v49  }
 0x196   : > { %v647_v23 = vmul.f32 1.442695, %v640_v50 }
 0x207   : > { %v652_v55 = vpop.permute.xlu0 %651 }
 0x208   : > { %v669_v56 = vsub.f32 %v1791_v14, %v652_v55 }
 0x20a   : > { %v673_v57 = vmul.f32 1.442695, %v669_v56  ;;  %v710_v56 = vld [vmem:[#allocation4] sm:$0xff] }
 0x20b   : > { %v657_v58 = vpop.permute.xlu1 %656 }
 0x20c   : > { %1539 = vpow2.f32 %v673_v57  ;;  %v670_v59 = vsub.f32 %v1793_v15, %v657_v58 }
 0x20e   : > { %v675_v60 = vmul.f32 1.442695, %v670_v59  ;;  %v711_v59 = vld [vmem:[#allocation4 + $0x8] sm:$0xff] }
 0x20f   : > { %v662_v61 = vpop.permute.xlu1 %661 }
 0x210   : > { %1541 = vpow2.f32 %v675_v60  ;;  %v671_v62 = vsub.f32 %v565_v24, %v662_v61 }
 0x212   : > { %v677_v63 = vmul.f32 1.442695, %v671_v62 }
 0x213   : > { %v667_v1 = vpop.permute.xlu1 %666 }
 0x214   : > { %1543 = vpow2.f32 %v677_v63  ;;  %v672_v2 = vsub.f32 %v1799_v25, %v667_v1 }
 0x216   : > { %v1540_v4 = vpop.eup %1539  ;;  %v679_v5 = vmul.f32 1.442695, %v672_v2 }
 0x217   : > { %v689_v6 = vsel %vm415_vm0, %v1540_v4, 0.0  ;;  %v738_v7 = vpack.c.bf16 %v1540_v4, %v1540_v4 }
 0x218   : > { %1545 = vpow2.f32 %v679_v5  ;;  %690 = vadd.xlane.f32.xlu1 %v689_v6  ;;  %v712_v5 = vld [vmem:[#allocation4 + $0x10] sm:$0xff] }
 0x219   : > { %1433 = vmatmul.mubr.msk.bf16.vlgmr.msra.gmra.mrb[8].mxu0 %vm415_vm0, %v738_v7  ;;  %1547 = vpow2.f32 %v643_v18 }
 0x21a   : > { %v1542_v10 = vpop.eup %1541  ;;  %1443 = vmatpush3.bf16.msra.mxu0 %v839_v8  ;;  %1444 = vmatprep.mubr.msk.bf16.mxu0 %vm1644_vm1, %v1643_v0  ;;  %1549 = vpow2.f32 %v641_v21 }
 0x21b   : > { %v692_v11 = vsel %vm415_vm0, %v1542_v10, 0.0  ;;  %v739_v12 = vpack.c.bf16 %v1542_v10, %v1542_v10  ;;  %1454 = vmatprep.subr.bf16.mxu0 %v1643_v0  ;;  %1551 = vpow2.f32 %v645_v22 }
 0x21c   : > { %693 = vadd.xlane.f32.xlu0 %v692_v11  ;;  %1553 = vpow2.f32 %v647_v23 }
 0x21d   : > { %1439 = vmatmul.mubr.msk.bf16.vlgmr.msra.gmra.mrb[8].mxu1 %vm415_vm0, %v739_v12  ;;  %v713_v12 = vld [vmem:[#allocation4 + $0x18] sm:$0xff] }
 0x21e   : > { %v1544_v14 = vpop.eup %1543  ;;  %1449 = vmatpush3.bf16.msra.mxu1 %v885_v13  ;;  %1450 = vmatprep.mubr.msk.bf16.mxu1 %vm1644_vm1, %v1643_v0 }
 0x21f   : > { %v695_v15 = vsel %vm415_vm0, %v1544_v14, 0.0  ;;  %v740_v16 = vpack.c.bf16 %v1544_v14, %v1544_v14  ;;  %1460 = vmatprep.subr.bf16.mxu1 %v1643_v0 }
 0x220   : > { %696 = vadd.xlane.f32.xlu1 %v695_v15 }
 0x221   : > { %1445 = vmatmul.mubr.msk.bf16.vlgmr.msra.gmra.mrb[12].mxu0 %vm415_vm0, %v740_v16 }
 0x222   : > { %v1546_v17 = vpop.eup %1545  ;;  %1456 = vmatprep.mubr.msk.bf16.mxu0 %vm1644_vm1, %v1643_v0  ;;  %1455 = vmatpush3.bf16.msra.mxu0 %v990_v29 }
 0x223   : > { %v698_v19 = vsel %vm415_vm0, %v1546_v17, 0.0  ;;  %v741_v20 = vpack.c.bf16 %v1546_v17, %v1546_v17  ;;  %v1548_v24 = vpop.eup %1547  ;;  %1466 = vmatprep.subr.bf16.mxu0 %v1643_v0 }
 0x224   : > { %699 = vadd.xlane.f32.xlu1 %v698_v19  ;;  %v1550_v25 = vpop.eup %1549  ;;  %v686_v35 = vmul.f32 %v1548_v24, %v682_v33  ;;  %v985_v33 = vld [vmem:[%s1993_s3 + $0xc] sm:$0xf] }
 0x225   : > { %1451 = vmatmul.mubr.msk.bf16.vlgmr.msra.gmra.mrb[12].mxu1 %vm415_vm0, %v741_v20  ;;  %v1552_v26 = vpop.eup %1551  ;;  %v685_v31 = vmul.f32 %v1550_v25, %v681_v30 }
 0x226   : > { %1462 = vmatprep.mubr.msk.bf16.mxu1 %vm1644_vm1, %v1643_v0  ;;  %v1554_v27 = vpop.eup %1553  ;;  %v687_v39 = vmul.f32 %v1552_v26, %v683_v37  ;;  %1461 = vmatpush3.bf16.msra.mxu1 %v1036_v53 }
 0x227   : > { %v688_v44 = vmul.f32 %v1554_v27, %v684_v41  ;;  %1472 = vmatprep.subr.bf16.mxu1 %v1643_v0 }
 0x232   : > { %721 = vperm.xlu0 %1537, %v1548_v24  }
 0x235   : > { %716 = vperm.xlu1 %1538, %v1550_v25  }
 0x239   : > { %726 = vperm.xlu1 %1538, %v1552_v26  }
 0x23d   : > { %731 = vperm.xlu1 %1538, %v1554_v27   ;;  %v984_v27 = vld [vmem:[%s1993_s3 + $0x8] sm:$0xf] }
 0x23e   : > { %v1082_v30 = vsel %vm745_vm3, %v984_v27, 0 }
 0x2a5   : > { %v691_v32 = vpop.xlane.xlu1 %690 }
 0x2a6   : > { %v701_v34 = vadd.f32 %v691_v32, %v685_v31 }
 0x2a8   : > { %706 = vst.msk [vmem:[#allocation3] sm:$0xff] %vm406_vm2, %v701_v34 }
 0x2a9   : > { %v694_v36 = vpop.xlane.xlu0 %693 }
 0x2aa   : > { %v702_v38 = vadd.f32 %v694_v36, %v686_v35  ;;  %v1128_v36 = vsel %vm745_vm3, %v985_v33, 0 }
 0x2ac   : > { %707 = vst.msk [vmem:[#allocation3 + $0x8] sm:$0xff] %vm406_vm2, %v702_v38 }
 0x2ad   : > { %v697_v40 = vpop.xlane.xlu1 %696 }
 0x2ae   : > { %v703_v42 = vadd.f32 %v697_v40, %v687_v39 }
 0x2af   : > { %v946_v43 = vld [vmem:[#allocation3] sm:$0xff] }
 0x2b0   : > { %708 = vst.msk [vmem:[#allocation3 + $0x10] sm:$0xff] %vm406_vm2, %v703_v42  ;;  %1555 = vrcp.f32 %v946_v43 }
 0x2b1   : > { %v700_v45 = vpop.xlane.xlu1 %699  ;;  %v722_v60 = vpop.permute.xlu0 %721 }
 0x2b2   : > { %v704_v46 = vadd.f32 %v700_v45, %v688_v44  ;;  %v735_v3 = vmul.f32 %v722_v60, %v711_v59 }
 0x2b3   : > { %v947_v47 = vld [vmem:[#allocation3 + $0x8] sm:$0xff] }
 0x2b4   : > { %709 = vst.msk [vmem:[#allocation3 + $0x18] sm:$0xff] %vm406_vm2, %v704_v46  ;;  %1557 = vrcp.f32 %v947_v47 }
 0x2b5   : > { %v717_v57 = vpop.permute.xlu1 %716 }
 0x2b6   : > { %v734_v58 = vmul.f32 %v717_v57, %v710_v56 }
 0x2b7   : > { %v948_v48 = vld [vmem:[#allocation3 + $0x10] sm:$0xff] }
 0x2b8   : > { %1559 = vrcp.f32 %v948_v48 }
 0x2b9   : > { %v727_v1 = vpop.permute.xlu1 %726 }
 0x2ba   : > { %v1556_v49 = vpop.eup %1555  ;;  %v736_v10 = vmul.f32 %v727_v1, %v712_v5 }
 0x2bb   : > { %956 = vperm.xlu1 %1538, %v1556_v49   ;;  %v949_v50 = vld [vmem:[#allocation3 + $0x18] sm:$0xff] }
 0x2bc   : > { %1561 = vrcp.f32 %v949_v50 }
 0x2bd   : > { %v732_v13 = vpop.permute.xlu1 %731 }
 0x2be   : > { %v1558_v52 = vpop.eup %1557  ;;  %v737_v18 = vmul.f32 %v732_v13, %v713_v12 }
 0x2bf   : > { %961 = vperm.xlu0 %1537, %v1558_v52  }
 0x2c2   : > { %v1560_v54 = vpop.eup %1559 }
 0x2c3   : > { %966 = vperm.xlu1 %1538, %v1560_v54  }
 0x2c6   : > { %v1562_v55 = vpop.eup %1561 }
 0x2c7   : > { %971 = vperm.xlu0 %1537, %v1562_v55  }
 0x2ec   : > { %v783_v61 = vpop.f32.mrb[8].mxu0 }
 0x2ed   : > { %v927_v62 = vadd.f32 %v783_v61, %v734_v58  ;;  %v1434_v63 = vpop.f32.mrb[9].mxu0 }
 0x2ee   : > { %v786_v2 = vpop.f32.mrb[10].mxu0 }
 0x2ef   : > { %931 = vst.msk [vmem:[#allocation4] sm:$0xff] %vm415_vm0, %v927_v62  ;;  %v1435_v4 = vpop.f32.mrb[11].mxu0  ;;  %v1170_v62 = vld [vmem:[#allocation5] sm:$0xff] }
 0x2f0   : > { %v829_v6 = vpop.f32.mrb[8].mxu1 }
 0x2f1   : > { %v928_v7 = vadd.f32 %v829_v6, %v735_v3  ;;  %v1440_v8 = vpop.f32.mrb[9].mxu1  ;;  %v1374_v6 = vld [vmem:[%s1994_s4] ss:$0 sm:$0xff] }
 0x2f2   : > { %v832_v9 = vpop.f32.mrb[10].mxu1 }
 0x2f3   : > { %932 = vst.msk [vmem:[#allocation4 + $0x8] sm:$0xff] %vm415_vm0, %v928_v7  ;;  %v1441_v11 = vpop.f32.mrb[11].mxu1 }
 0x2f4   : > { %v875_v14 = vpop.f32.mrb[12].mxu0 }
 0x2f5   : > { %v929_v15 = vadd.f32 %v875_v14, %v736_v10  ;;  %v1446_v16 = vpop.f32.mrb[13].mxu0 }
 0x2f6   : > { %v878_v17 = vpop.f32.mrb[14].mxu0  ;;  %v942_v26 = vld [vmem:[#allocation4] sm:$0xff] }
 0x2f7   : > { %933 = vst.msk [vmem:[#allocation4 + $0x10] sm:$0xff] %vm415_vm0, %v929_v15  ;;  %v1447_v19 = vpop.f32.mrb[15].mxu0 }
 0x2f8   : > { %v921_v20 = vpop.f32.mrb[12].mxu1 }
 0x2f9   : > { %v930_v21 = vadd.f32 %v921_v20, %v737_v18  ;;  %v1452_v22 = vpop.f32.mrb[13].mxu1 }
 0x2fa   : > { %v924_v23 = vpop.f32.mrb[14].mxu1  ;;  %v943_v31 = vld [vmem:[#allocation4 + $0x8] sm:$0xff] }
 0x2fb   : > { %934 = vst.msk [vmem:[#allocation4 + $0x18] sm:$0xff] %vm415_vm0, %v930_v21  ;;  %v1453_v24 = vpop.f32.mrb[15].mxu1 }
 0x2fe   : > { %v944_v38 = vld [vmem:[#allocation4 + $0x10] sm:$0xff] }
 0x302   : > { %v945_v42 = vld [vmem:[#allocation4 + $0x18] sm:$0xff] }
 0x33a   : > { %v957_v25 = vpop.permute.xlu1 %956 }
 0x33b   : > { %v974_v28 = vmul.f32 %v957_v25, %v942_v26 }
 0x33d   : > { %v978_v29 = vpack.c.bf16 %v974_v28, %v974_v28 }
 0x33e   : > { %v962_v32 = vpop.permute.xlu0 %961 }
 0x33f   : > { %v975_v34 = vmul.f32 %v962_v32, %v943_v31  ;;  %1457 = vmatmul.mubr.msk.bf16.vlgmr.msra.gmra.mrb[16].mxu0 %vm415_vm0, %v978_v29 }
 0x340   : > { %1467 = vmatpush3.bf16.msra.mxu0 %v1082_v30  ;;  %1468 = vmatprep.mubr.msk.bf16.mxu0 %vm1644_vm1, %v1643_v0 }
 0x341   : > { %v979_v35 = vpack.c.bf16 %v975_v34, %v975_v34 }
 0x342   : > { %v967_v37 = vpop.permute.xlu1 %966 }
 0x343   : > { %v976_v39 = vmul.f32 %v967_v37, %v944_v38  ;;  %1463 = vmatmul.mubr.msk.bf16.vlgmr.msra.gmra.mrb[16].mxu1 %vm415_vm0, %v979_v35 }
 0x344   : > { %1473 = vmatpush3.bf16.msra.mxu1 %v1128_v36  ;;  %1474 = vmatprep.mubr.msk.bf16.mxu1 %vm1644_vm1, %v1643_v0 }
 0x345   : > { %v980_v40 = vpack.c.bf16 %v976_v39, %v976_v39 }
 0x346   : > { %v972_v41 = vpop.permute.xlu0 %971 }
 0x347   : > { %v977_v43 = vmul.f32 %v972_v41, %v945_v42  ;;  %1469 = vmatmul.mubr.msk.bf16.vlgmr.msra.gmra.mrb[20].mxu0 %vm415_vm0, %v980_v40 }
 0x349   : > { %v981_v44 = vpack.c.bf16 %v977_v43, %v977_v43 }
 0x34b   : > { %1475 = vmatmul.mubr.msk.bf16.vlgmr.msra.gmra.mrb[20].mxu1 %vm415_vm0, %v981_v44 }
 0x412   : > { %v1026_v45 = vpop.f32.mrb[16].mxu0 }
 0x413   : > { %v1458_v46 = vpop.f32.mrb[17].mxu0  ;;  %v1172_v50 = vsel %vm401_vm4, %v1026_v45, 0.0 }
 0x414   : > { %v1029_v47 = vpop.f32.mrb[18].mxu0 }
 0x415   : > { %v1459_v48 = vpop.f32.mrb[19].mxu0 }
 0x416   : > { %v1072_v49 = vpop.f32.mrb[16].mxu1 }
 0x417   : > { %v1173_v51 = vsel %vm401_vm4, %v1072_v49, 0.0  ;;  %v1464_v52 = vpop.f32.mrb[17].mxu1 }
 0x418   : > { %v1174_v0 = vadd.f32 %v1173_v51, %v1172_v50  ;;  %v1075_v53 = vpop.f32.mrb[18].mxu1 }
 0x419   : > { %v1465_v54 = vpop.f32.mrb[19].mxu1 }
 0x41a   : > { %v1118_v55 = vpop.f32.mrb[20].mxu0 }
 0x41b   : > { %v1175_v56 = vsel %vm401_vm4, %v1118_v55, 0.0  ;;  %v1470_v57 = vpop.f32.mrb[21].mxu0 }
 0x41c   : > { %v1176_v58 = vadd.f32 %v1175_v56, %v1174_v0  ;;  %v1121_v59 = vpop.f32.mrb[22].mxu0 }
 0x41d   : > { %v1471_v60 = vpop.f32.mrb[23].mxu0 }
 0x41e   : > { %v1164_v61 = vpop.f32.mrb[20].mxu1 }
 0x41f   : > { %v1177_v63 = vsel %vm401_vm4, %v1164_v61, 0.0  ;;  %v1476_v1 = vpop.f32.mrb[21].mxu1 }
 0x420   : > { %v1178_v2 = vadd.f32 %v1177_v63, %v1176_v58  ;;  %v1167_v3 = vpop.f32.mrb[22].mxu1 }
 0x421   : > { %v1477_v4 = vpop.f32.mrb[23].mxu1 }
 0x422   : > { %v1179_v5 = vadd.f32 %v1178_v2, %v1170_v62 }
 0x424   : > { %1180 = vst.msk [vmem:[#allocation5] sm:$0xff] %vm401_vm4, %v1179_v5 }
 0x42b   : > { %v1183_v7 = vld [vmem:[#allocation5] sm:$0xff] }
 0x42c   : > { %v1191_v8 = vadd.f32 %v1374_v6, %v1183_v7 }
 0x42e   : > { %1193 = vst.msk [vmem:[%s348_s16] sm:$0xff] %vm401_vm4, %v1191_v8 }
 0x42f   : > { %1576 = shalt.err (!%p1573_p5)
}
 0x430   : > { %s1577_s10 = scalar_lea.hbm %s1942_s27, 128  ;;  %s1581_s13 = scalar_lea.hbm %s1995_s5, 256 }
 0x431   : > { %p1578_p6 = scmp.ne.s32.totalorder %s1942_s27, %s1577_s10  ;;  %p1582_p10 = scmp.lt.u32.totalorder %s1942_s27, %s1995_s5 }
 0x432   : > { %p1583_p11 = scmp.lt.u32.totalorder %s1581_s13, %s1577_s10  ;;  %p1585_p13 = scmp.lt.u32.totalorder %s1577_s10, %s1942_s27 }
 0x433   : > { %p1579_p7 = pnand %p1578_p6, %p1718_p4 }
 0x434   : > { %p1584_p12 = por %p1583_p11, %p1582_p10 }
 0x435   : > { %p1580_p9 = pneg %p1579_p7 }
 0x436   : > { %p1586_p0 = por %p1585_p13, %p1584_p12 }
 0x438   : > { %p1587_p1 = pnand %p1586_p0, %p1580_p9 }
 0x43a   : > { %1590 = shalt.err (!%p1587_p1)
}
 0x43b   : > { %1478 = dma.vmem_to_hbm [thread:$0]  (%p1718_p4), %s1944_s17, 128, %s1942_s27, %s1195_s29  }
 0x43c PF: > { %p1484_p2 = scmp.ge.s32.totalorder %s1641_s23, 2  ;;  %s1221_s16 = sand.u32 1, %s1621_s18  }
 0x43d   : > { %s1222_s24 = scalar_lea.sflag [#allocation7], %s1221_s16 }
 0x43e   : > { %p1481_p3 = pnand %p1484_p2, %p1725_p8 }
 0x440   : > { %1616 = dma.done.wait (!%p1481_p3), %s1222_s24, 128  }
 0x441   : > { %1618 = vsyncadd (!%p1481_p3), %s1222_s24, 4294967168  ;;  %s18_s23 = sadd.s32 1, %s1641_s23   ;;  %s1998_s18 = smov %s1625_s19 }
 0x442   : > { %p15_p5 = scmp.ge.s32.totalorder %s18_s23, 4   ;;  %s1999_s19 = smov %s1629_s20 }
 0x443   : > { %s2000_s20 = smov %s1731_s6  ;;  %s2001_s21 = smov %s1637_s22 }
 0x444   : > { %s2002_s22 = smov %s2004_s26  ;;  %17 = sbr.rel (!%p15_p5) target bundleno = 4 (0x4), region = 100 }
 0x44b   :  { %1227 = vsyncpa [#allocation7], 1 }
 0x44c   :  { %1229 = vsyncpa [#allocation7 + $0x1], 1 }

</bundles_post_ra>
